<compile_context>
chip_gen: v7x
topology: tpu7x:2x2x1
jax: 0.10.0
libtpu: 0.0.40
codegen_flags: <defaults>
</compile_context>

<pallas_src>
import math

import jax
import jax.numpy as jnp
from jax.experimental import pallas as pl
from jax.experimental.pallas import tpu as pltpu


def nbow_kernel(ids_ref, emb_ref, w1_ref, b1_ref, w2_ref, b2_ref,
                w3_ref, b3_ref, out_ref):
    ids = ids_ref[...]                         # (TB, S) int32
    tb, seq = ids.shape
    vp = emb_ref.shape[0]                      # padded vocab (lane dim of counts)

    # 2-D token-count accumulation (no 3-D one-hot).  Integer compares,
    # summed in int32, cast once afterwards.  S is small & static -> unrolled.
    vocab_iota = jax.lax.broadcasted_iota(jnp.int32, (tb, vp), 1)
    counts = jnp.zeros((tb, vp), jnp.int32)
    for s in range(seq):
        counts = counts + (ids[:, s:s + 1] == vocab_iota).astype(jnp.int32)

    # counts <= S, exact in bf16; pooled mean via one MXU matmul.
    counts_bf = counts.astype(jnp.float32).astype(jnp.bfloat16)
    pooled = jnp.dot(counts_bf, emb_ref[...],
                     preferred_element_type=jnp.float32) * (1.0 / seq)  # (TB, Ep) f32

    h1 = jnp.maximum(
        jnp.dot(pooled.astype(jnp.bfloat16), w1_ref[...],
                preferred_element_type=jnp.float32) + b1_ref[...], 0.0)  # (TB, Hp)
    h2 = jnp.maximum(
        jnp.dot(h1.astype(jnp.bfloat16), w2_ref[...],
                preferred_element_type=jnp.float32) + b2_ref[...], 0.0)  # (TB, Hp)
    out_ref[...] = (
        jnp.dot(h2.astype(jnp.bfloat16), w3_ref[...],
                preferred_element_type=jnp.float32) + b3_ref[...])       # (TB, Op)


def _round_up(x, m):
    return (x + m - 1) // m * m


def nbow_forward(ids, emb, w1, b1, w2, b2, w3, b3, *, tile_b=8):
    """ids: (B, S) int32.  Weights stored pre-transposed as (in, out).

    Returns logits (B, output_dim) float32.
    """
    B, S = ids.shape
    V, E = emb.shape
    H = w1.shape[1]
    O = w3.shape[1]

    # Pad every lane dimension to a multiple of 128 (lane-dense vregs / MXU /
    # unmasked output stores); pad batch to a multiple of the batch tile.
    Vp, Ep, Hp, Op = (_round_up(d, 128) for d in (V, E, H, O))
    Bp = _round_up(B, tile_b)

    ids_p = jnp.pad(ids, ((0, Bp - B), (0, 0)))          # pad rows with id 0
    emb_p = jnp.pad(emb, ((0, Vp - V), (0, Ep - E))).astype(jnp.bfloat16)
    w1_p = jnp.pad(w1, ((0, Ep - E), (0, Hp - H))).astype(jnp.bfloat16)
    w2_p = jnp.pad(w2, ((0, Hp - H), (0, Hp - H))).astype(jnp.bfloat16)
    w3_p = jnp.pad(w3, ((0, Hp - H), (0, Op - O))).astype(jnp.bfloat16)
    b1_p = jnp.pad(b1, ((0, 0), (0, Hp - H))).astype(jnp.float32)
    b2_p = jnp.pad(b2, ((0, 0), (0, Hp - H))).astype(jnp.float32)
    b3_p = jnp.pad(b3, ((0, 0), (0, Op - O))).astype(jnp.float32)

    grid = (Bp // tile_b,)
    out = pl.pallas_call(
        nbow_kernel,
        out_shape=jax.ShapeDtypeStruct((Bp, Op), jnp.float32),
        grid_spec=pltpu.PrefetchScalarGridSpec(
            num_scalar_prefetch=0,
            grid=grid,
            in_specs=[
                # Batch-tiled ids; everything else constant across the grid,
                # so weights/biases stay resident in VMEM.
                pl.BlockSpec((tile_b, S), lambda i: (i, 0)),
                pl.BlockSpec((Vp, Ep), lambda i: (0, 0)),
                pl.BlockSpec((Ep, Hp), lambda i: (0, 0)),
                pl.BlockSpec((1, Hp), lambda i: (0, 0)),
                pl.BlockSpec((Hp, Hp), lambda i: (0, 0)),
                pl.BlockSpec((1, Hp), lambda i: (0, 0)),
                pl.BlockSpec((Hp, Op), lambda i: (0, 0)),
                pl.BlockSpec((1, Op), lambda i: (0, 0)),
            ],
            out_specs=pl.BlockSpec((tile_b, Op), lambda i: (i, 0)),
        ),
        compiler_params=pltpu.CompilerParams(
            dimension_semantics=("parallel",)),
    )(ids_p, emb_p, w1_p, b1_p, w2_p, b2_p, w3_p, b3_p)

    return out[:B, :O]


def xavier_uniform(key, fan_in, fan_out):
    bound = math.sqrt(6.0 / (fan_in + fan_out))
    # PyTorch Linear.weight is (out, in); we store transposed (in, out).
    return jax.random.uniform(key, (fan_in, fan_out), jnp.float32,
                              minval=-bound, maxval=bound)


if __name__ == "__main__":
    # Small shapes consistent with the module's forward.
    vocab_size = 64
    embedding_dim = 32
    hidden_dim = 64
    output_dim = 2
    pad_index = 0
    batch, seq_len = 8, 16

    key = jax.random.PRNGKey(0)
    k_ids, k_emb, k_w1, k_w2, k_w3 = jax.random.split(key, 5)

    # Deterministic parameter init mirroring NBoW._init_weights
    # (params stored in bf16, biases in f32).
    emb = 0.1 * jax.random.normal(k_emb, (vocab_size, embedding_dim),
                                  jnp.float32)
    emb = emb.at[pad_index].set(0.0)                 # padding_idx row = 0
    emb = emb.astype(jnp.bfloat16)
    w1 = xavier_uniform(k_w1, embedding_dim, hidden_dim).astype(jnp.bfloat16)
    b1 = jnp.zeros((1, hidden_dim), jnp.float32)
    w2 = xavier_uniform(k_w2, hidden_dim, hidden_dim).astype(jnp.bfloat16)
    b2 = jnp.zeros((1, hidden_dim), jnp.float32)
    w3 = xavier_uniform(k_w3, hidden_dim, output_dim).astype(jnp.bfloat16)
    b3 = jnp.zeros((1, output_dim), jnp.float32)

    ids = jax.random.randint(k_ids, (batch, seq_len), 0, vocab_size,
                             dtype=jnp.int32)

    logits = nbow_forward(ids, emb, w1, b1, w2, b2, w3, b3)
    jax.block_until_ready(logits)

    # Pure-JAX reference (same bf16 params / f32 accumulation) for sanity.
    pooled_ref = jnp.mean(emb[ids].astype(jnp.float32), axis=1)
    h1_ref = jnp.maximum(
        jnp.dot(pooled_ref.astype(jnp.bfloat16), w1,
                preferred_element_type=jnp.float32) + b1, 0.0)
    h2_ref = jnp.maximum(
        jnp.dot(h1_ref.astype(jnp.bfloat16), w2,
                preferred_element_type=jnp.float32) + b2, 0.0)
    logits_ref = jnp.dot(h2_ref.astype(jnp.bfloat16), w3,
                         preferred_element_type=jnp.float32) + b3

    assert logits.shape == (batch, output_dim)
    assert jnp.allclose(logits, logits_ref, atol=1e-2, rtol=1e-2)

    print("KERNEL_OK")
</pallas_src>

<mosaic_0001>
module attributes {stable_mosaic.version = 11 : i64} {
  func.func @nbow_kernel(%arg0: i32, %arg1: memref<8x16xi32, #tpu.memory_space<vmem>>, %arg2: memref<128x128xbf16, #tpu.memory_space<vmem>>, %arg3: memref<128x128xbf16, #tpu.memory_space<vmem>>, %arg4: memref<1x128xf32, #tpu.memory_space<vmem>>, %arg5: memref<128x128xbf16, #tpu.memory_space<vmem>>, %arg6: memref<1x128xf32, #tpu.memory_space<vmem>>, %arg7: memref<128x128xbf16, #tpu.memory_space<vmem>>, %arg8: memref<1x128xf32, #tpu.memory_space<vmem>>, %arg9: memref<8x128xf32, #tpu.memory_space<vmem>>) attributes {dimension_semantics = [#tpu.dimension_semantics<parallel>], iteration_bounds = array<i64: 1>, scalar_prefetch = 0 : i64, scratch_operands = 0 : i64, tpu.core_type = #tpu.core_type<tc>, window_params = [{transform_indices = @transform_0, window_bounds = array<i64: 8, 16>}, {pipeline_mode = #tpu.pipeline_mode<synchronous>, transform_indices = @transform_1, window_bounds = array<i64: 128, 128>}, {pipeline_mode = #tpu.pipeline_mode<synchronous>, transform_indices = @transform_2, window_bounds = array<i64: 128, 128>}, {pipeline_mode = #tpu.pipeline_mode<synchronous>, transform_indices = @transform_3, window_bounds = array<i64: 1, 128>}, {pipeline_mode = #tpu.pipeline_mode<synchronous>, transform_indices = @transform_4, window_bounds = array<i64: 128, 128>}, {pipeline_mode = #tpu.pipeline_mode<synchronous>, transform_indices = @transform_5, window_bounds = array<i64: 1, 128>}, {pipeline_mode = #tpu.pipeline_mode<synchronous>, transform_indices = @transform_6, window_bounds = array<i64: 128, 128>}, {pipeline_mode = #tpu.pipeline_mode<synchronous>, transform_indices = @transform_7, window_bounds = array<i64: 1, 128>}, {transform_indices = @transform_8, window_bounds = array<i64: 8, 128>}]} {
    %c0 = arith.constant 0 : index
    %c0_0 = arith.constant 0 : index
    %0 = vector.load %arg1[%c0, %c0_0] : memref<8x16xi32, #tpu.memory_space<vmem>>, vector<8x16xi32>
    %1 = tpu.iota {dimensions = array<i32: 1>} : vector<8x128xi32>
    %c0_i32 = arith.constant 0 : i32
    %2 = vector.broadcast %c0_i32 : i32 to vector<8x128xi32>
    %3 = vector.extract_strided_slice %0 {offsets = [0, 0], sizes = [8, 1], strides = [1, 1]} : vector<8x16xi32> to vector<8x1xi32>
    %4 = vector.broadcast %3 : vector<8x1xi32> to vector<8x128xi32>
    %5 = arith.cmpi eq, %4, %1 : vector<8x128xi32>
    %6 = arith.extui %5 : vector<8x128xi1> to vector<8x128xi32>
    %7 = arith.addi %2, %6 : vector<8x128xi32>
    %8 = vector.extract_strided_slice %0 {offsets = [0, 1], sizes = [8, 1], strides = [1, 1]} : vector<8x16xi32> to vector<8x1xi32>
    %9 = vector.broadcast %8 : vector<8x1xi32> to vector<8x128xi32>
    %10 = arith.cmpi eq, %9, %1 : vector<8x128xi32>
    %11 = arith.extui %10 : vector<8x128xi1> to vector<8x128xi32>
    %12 = arith.addi %7, %11 : vector<8x128xi32>
    %13 = vector.extract_strided_slice %0 {offsets = [0, 2], sizes = [8, 1], strides = [1, 1]} : vector<8x16xi32> to vector<8x1xi32>
    %14 = vector.broadcast %13 : vector<8x1xi32> to vector<8x128xi32>
    %15 = arith.cmpi eq, %14, %1 : vector<8x128xi32>
    %16 = arith.extui %15 : vector<8x128xi1> to vector<8x128xi32>
    %17 = arith.addi %12, %16 : vector<8x128xi32>
    %18 = vector.extract_strided_slice %0 {offsets = [0, 3], sizes = [8, 1], strides = [1, 1]} : vector<8x16xi32> to vector<8x1xi32>
    %19 = vector.broadcast %18 : vector<8x1xi32> to vector<8x128xi32>
    %20 = arith.cmpi eq, %19, %1 : vector<8x128xi32>
    %21 = arith.extui %20 : vector<8x128xi1> to vector<8x128xi32>
    %22 = arith.addi %17, %21 : vector<8x128xi32>
    %23 = vector.extract_strided_slice %0 {offsets = [0, 4], sizes = [8, 1], strides = [1, 1]} : vector<8x16xi32> to vector<8x1xi32>
    %24 = vector.broadcast %23 : vector<8x1xi32> to vector<8x128xi32>
    %25 = arith.cmpi eq, %24, %1 : vector<8x128xi32>
    %26 = arith.extui %25 : vector<8x128xi1> to vector<8x128xi32>
    %27 = arith.addi %22, %26 : vector<8x128xi32>
    %28 = vector.extract_strided_slice %0 {offsets = [0, 5], sizes = [8, 1], strides = [1, 1]} : vector<8x16xi32> to vector<8x1xi32>
    %29 = vector.broadcast %28 : vector<8x1xi32> to vector<8x128xi32>
    %30 = arith.cmpi eq, %29, %1 : vector<8x128xi32>
    %31 = arith.extui %30 : vector<8x128xi1> to vector<8x128xi32>
    %32 = arith.addi %27, %31 : vector<8x128xi32>
    %33 = vector.extract_strided_slice %0 {offsets = [0, 6], sizes = [8, 1], strides = [1, 1]} : vector<8x16xi32> to vector<8x1xi32>
    %34 = vector.broadcast %33 : vector<8x1xi32> to vector<8x128xi32>
    %35 = arith.cmpi eq, %34, %1 : vector<8x128xi32>
    %36 = arith.extui %35 : vector<8x128xi1> to vector<8x128xi32>
    %37 = arith.addi %32, %36 : vector<8x128xi32>
    %38 = vector.extract_strided_slice %0 {offsets = [0, 7], sizes = [8, 1], strides = [1, 1]} : vector<8x16xi32> to vector<8x1xi32>
    %39 = vector.broadcast %38 : vector<8x1xi32> to vector<8x128xi32>
    %40 = arith.cmpi eq, %39, %1 : vector<8x128xi32>
    %41 = arith.extui %40 : vector<8x128xi1> to vector<8x128xi32>
    %42 = arith.addi %37, %41 : vector<8x128xi32>
    %43 = vector.extract_strided_slice %0 {offsets = [0, 8], sizes = [8, 1], strides = [1, 1]} : vector<8x16xi32> to vector<8x1xi32>
    %44 = vector.broadcast %43 : vector<8x1xi32> to vector<8x128xi32>
    %45 = arith.cmpi eq, %44, %1 : vector<8x128xi32>
    %46 = arith.extui %45 : vector<8x128xi1> to vector<8x128xi32>
    %47 = arith.addi %42, %46 : vector<8x128xi32>
    %48 = vector.extract_strided_slice %0 {offsets = [0, 9], sizes = [8, 1], strides = [1, 1]} : vector<8x16xi32> to vector<8x1xi32>
    %49 = vector.broadcast %48 : vector<8x1xi32> to vector<8x128xi32>
    %50 = arith.cmpi eq, %49, %1 : vector<8x128xi32>
    %51 = arith.extui %50 : vector<8x128xi1> to vector<8x128xi32>
    %52 = arith.addi %47, %51 : vector<8x128xi32>
    %53 = vector.extract_strided_slice %0 {offsets = [0, 10], sizes = [8, 1], strides = [1, 1]} : vector<8x16xi32> to vector<8x1xi32>
    %54 = vector.broadcast %53 : vector<8x1xi32> to vector<8x128xi32>
    %55 = arith.cmpi eq, %54, %1 : vector<8x128xi32>
    %56 = arith.extui %55 : vector<8x128xi1> to vector<8x128xi32>
    %57 = arith.addi %52, %56 : vector<8x128xi32>
    %58 = vector.extract_strided_slice %0 {offsets = [0, 11], sizes = [8, 1], strides = [1, 1]} : vector<8x16xi32> to vector<8x1xi32>
    %59 = vector.broadcast %58 : vector<8x1xi32> to vector<8x128xi32>
    %60 = arith.cmpi eq, %59, %1 : vector<8x128xi32>
    %61 = arith.extui %60 : vector<8x128xi1> to vector<8x128xi32>
    %62 = arith.addi %57, %61 : vector<8x128xi32>
    %63 = vector.extract_strided_slice %0 {offsets = [0, 12], sizes = [8, 1], strides = [1, 1]} : vector<8x16xi32> to vector<8x1xi32>
    %64 = vector.broadcast %63 : vector<8x1xi32> to vector<8x128xi32>
    %65 = arith.cmpi eq, %64, %1 : vector<8x128xi32>
    %66 = arith.extui %65 : vector<8x128xi1> to vector<8x128xi32>
    %67 = arith.addi %62, %66 : vector<8x128xi32>
    %68 = vector.extract_strided_slice %0 {offsets = [0, 13], sizes = [8, 1], strides = [1, 1]} : vector<8x16xi32> to vector<8x1xi32>
    %69 = vector.broadcast %68 : vector<8x1xi32> to vector<8x128xi32>
    %70 = arith.cmpi eq, %69, %1 : vector<8x128xi32>
    %71 = arith.extui %70 : vector<8x128xi1> to vector<8x128xi32>
    %72 = arith.addi %67, %71 : vector<8x128xi32>
    %73 = vector.extract_strided_slice %0 {offsets = [0, 14], sizes = [8, 1], strides = [1, 1]} : vector<8x16xi32> to vector<8x1xi32>
    %74 = vector.broadcast %73 : vector<8x1xi32> to vector<8x128xi32>
    %75 = arith.cmpi eq, %74, %1 : vector<8x128xi32>
    %76 = arith.extui %75 : vector<8x128xi1> to vector<8x128xi32>
    %77 = arith.addi %72, %76 : vector<8x128xi32>
    %78 = vector.extract_strided_slice %0 {offsets = [0, 15], sizes = [8, 1], strides = [1, 1]} : vector<8x16xi32> to vector<8x1xi32>
    %79 = vector.broadcast %78 : vector<8x1xi32> to vector<8x128xi32>
    %80 = arith.cmpi eq, %79, %1 : vector<8x128xi32>
    %81 = arith.extui %80 : vector<8x128xi1> to vector<8x128xi32>
    %82 = arith.addi %77, %81 : vector<8x128xi32>
    %83 = arith.sitofp %82 : vector<8x128xi32> to vector<8x128xf32>
    %84 = arith.truncf %83 : vector<8x128xf32> to vector<8x128xbf16>
    %c0_1 = arith.constant 0 : index
    %c0_2 = arith.constant 0 : index
    %85 = vector.load %arg2[%c0_1, %c0_2] : memref<128x128xbf16, #tpu.memory_space<vmem>>, vector<128x128xbf16>
    %cst = arith.constant dense<0.000000e+00> : vector<8x128xf32>
    %86 = tpu.matmul %84, %85, %cst {dimension_numbers = #tpu.dot_dimension_numbers<[1], [0], [0], [1], [0, 0, 1, 1], [], []>} : vector<8x128xbf16>, vector<128x128xbf16>, vector<8x128xf32> -> vector<8x128xf32>
    %cst_3 = arith.constant 6.250000e-02 : f32
    %87 = vector.broadcast %cst_3 : f32 to vector<8x128xf32>
    %88 = arith.mulf %86, %87 : vector<8x128xf32>
    %89 = arith.truncf %88 : vector<8x128xf32> to vector<8x128xbf16>
    %c0_4 = arith.constant 0 : index
    %c0_5 = arith.constant 0 : index
    %90 = vector.load %arg3[%c0_4, %c0_5] : memref<128x128xbf16, #tpu.memory_space<vmem>>, vector<128x128xbf16>
    %cst_6 = arith.constant dense<0.000000e+00> : vector<8x128xf32>
    %91 = tpu.matmul %89, %90, %cst_6 {dimension_numbers = #tpu.dot_dimension_numbers<[1], [0], [0], [1], [0, 0, 1, 1], [], []>} : vector<8x128xbf16>, vector<128x128xbf16>, vector<8x128xf32> -> vector<8x128xf32>
    %c0_7 = arith.constant 0 : index
    %c0_8 = arith.constant 0 : index
    %92 = vector.load %arg4[%c0_7, %c0_8] : memref<1x128xf32, #tpu.memory_space<vmem>>, vector<1x128xf32>
    %93 = vector.broadcast %92 : vector<1x128xf32> to vector<8x128xf32>
    %94 = arith.addf %91, %93 : vector<8x128xf32>
    %cst_9 = arith.constant 0.000000e+00 : f32
    %95 = vector.broadcast %cst_9 : f32 to vector<8x128xf32>
    %96 = arith.maximumf %94, %95 : vector<8x128xf32>
    %97 = arith.truncf %96 : vector<8x128xf32> to vector<8x128xbf16>
    %c0_10 = arith.constant 0 : index
    %c0_11 = arith.constant 0 : index
    %98 = vector.load %arg5[%c0_10, %c0_11] : memref<128x128xbf16, #tpu.memory_space<vmem>>, vector<128x128xbf16>
    %cst_12 = arith.constant dense<0.000000e+00> : vector<8x128xf32>
    %99 = tpu.matmul %97, %98, %cst_12 {dimension_numbers = #tpu.dot_dimension_numbers<[1], [0], [0], [1], [0, 0, 1, 1], [], []>} : vector<8x128xbf16>, vector<128x128xbf16>, vector<8x128xf32> -> vector<8x128xf32>
    %c0_13 = arith.constant 0 : index
    %c0_14 = arith.constant 0 : index
    %100 = vector.load %arg6[%c0_13, %c0_14] : memref<1x128xf32, #tpu.memory_space<vmem>>, vector<1x128xf32>
    %101 = vector.broadcast %100 : vector<1x128xf32> to vector<8x128xf32>
    %102 = arith.addf %99, %101 : vector<8x128xf32>
    %cst_15 = arith.constant 0.000000e+00 : f32
    %103 = vector.broadcast %cst_15 : f32 to vector<8x128xf32>
    %104 = arith.maximumf %102, %103 : vector<8x128xf32>
    %105 = arith.truncf %104 : vector<8x128xf32> to vector<8x128xbf16>
    %c0_16 = arith.constant 0 : index
    %c0_17 = arith.constant 0 : index
    %106 = vector.load %arg7[%c0_16, %c0_17] : memref<128x128xbf16, #tpu.memory_space<vmem>>, vector<128x128xbf16>
    %cst_18 = arith.constant dense<0.000000e+00> : vector<8x128xf32>
    %107 = tpu.matmul %105, %106, %cst_18 {dimension_numbers = #tpu.dot_dimension_numbers<[1], [0], [0], [1], [0, 0, 1, 1], [], []>} : vector<8x128xbf16>, vector<128x128xbf16>, vector<8x128xf32> -> vector<8x128xf32>
    %c0_19 = arith.constant 0 : index
    %c0_20 = arith.constant 0 : index
    %108 = vector.load %arg8[%c0_19, %c0_20] : memref<1x128xf32, #tpu.memory_space<vmem>>, vector<1x128xf32>
    %109 = vector.broadcast %108 : vector<1x128xf32> to vector<8x128xf32>
    %110 = arith.addf %107, %109 : vector<8x128xf32>
    %c0_21 = arith.constant 0 : index
    %c0_22 = arith.constant 0 : index
    %111 = vector.load %arg9[%c0_21, %c0_22] : memref<8x128xf32, #tpu.memory_space<vmem>>, vector<8x128xf32>
    tpu.vector_store %arg9[%c0_21, %c0_22], %110 {strides = array<i32>} : memref<8x128xf32, #tpu.memory_space<vmem>>, vector<8x128xf32>,
    return
  }
  func.func @transform_0(%arg0: i32) -> (i32, i32) {
    %c0_i32 = arith.constant 0 : i32
    %c0_i32_0 = arith.constant 0 : i32
    return %arg0, %c0_i32 : i32, i32
  }
  func.func @transform_1(%arg0: i32) -> (i32, i32) {
    %c0_i32 = arith.constant 0 : i32
    %c0_i32_0 = arith.constant 0 : i32
    %c0_i32_1 = arith.constant 0 : i32
    return %c0_i32, %c0_i32_0 : i32, i32
  }
  func.func @transform_2(%arg0: i32) -> (i32, i32) {
    %c0_i32 = arith.constant 0 : i32
    %c0_i32_0 = arith.constant 0 : i32
    %c0_i32_1 = arith.constant 0 : i32
    return %c0_i32, %c0_i32_0 : i32, i32
  }
  func.func @transform_3(%arg0: i32) -> (i32, i32) {
    %c0_i32 = arith.constant 0 : i32
    %c0_i32_0 = arith.constant 0 : i32
    %c0_i32_1 = arith.constant 0 : i32
    return %c0_i32, %c0_i32_0 : i32, i32
  }
  func.func @transform_4(%arg0: i32) -> (i32, i32) {
    %c0_i32 = arith.constant 0 : i32
    %c0_i32_0 = arith.constant 0 : i32
    %c0_i32_1 = arith.constant 0 : i32
    return %c0_i32, %c0_i32_0 : i32, i32
  }
  func.func @transform_5(%arg0: i32) -> (i32, i32) {
    %c0_i32 = arith.constant 0 : i32
    %c0_i32_0 = arith.constant 0 : i32
    %c0_i32_1 = arith.constant 0 : i32
    return %c0_i32, %c0_i32_0 : i32, i32
  }
  func.func @transform_6(%arg0: i32) -> (i32, i32) {
    %c0_i32 = arith.constant 0 : i32
    %c0_i32_0 = arith.constant 0 : i32
    %c0_i32_1 = arith.constant 0 : i32
    return %c0_i32, %c0_i32_0 : i32, i32
  }
  func.func @transform_7(%arg0: i32) -> (i32, i32) {
    %c0_i32 = arith.constant 0 : i32
    %c0_i32_0 = arith.constant 0 : i32
    %c0_i32_1 = arith.constant 0 : i32
    return %c0_i32, %c0_i32_0 : i32, i32
  }
  func.func @transform_8(%arg0: i32) -> (i32, i32) {
    %c0_i32 = arith.constant 0 : i32
    %c0_i32_0 = arith.constant 0 : i32
    return %arg0, %c0_i32 : i32, i32
  }
}

</mosaic_0001>

<bundles_post_ra>
// kernel: tpu_custom_call.1
= control target key start
LH: loop header
LB: loop body
LE: loop exit
PB: predicated region body
PF: predicated region fallthrough
CT: control target
= control target key end

     0   :  { %13 = vsyncpa [#allocation3], 0  ;;  %s1281_s0 = inlined_call_operand.hbm [shape: s32[8,16], index: 0, kind: input, shape index: {}]   ;;  %s1282_s1 = inlined_call_operand.hbm [shape: bf16[128,128], index: 1, kind: input, shape index: {}]   ;;  %s1283_s2 = inlined_call_operand.hbm [shape: bf16[128,128], index: 2, kind: input, shape index: {}]   ;;  %s1284_s3 = inlined_call_operand.vmem [shape: f32[1,128], index: 3, kind: input, shape index: {}]   ;;  %s1285_s4 = inlined_call_operand.hbm [shape: bf16[128,128], index: 4, kind: input, shape index: {}]   ;;  %s1286_s5 = inlined_call_operand.vmem [shape: f32[1,128], index: 5, kind: input, shape index: {}]   ;;  %s1287_s6 = inlined_call_operand.hbm [shape: bf16[128,128], index: 6, kind: input, shape index: {}]   ;;  %s1288_s7 = inlined_call_operand.vmem [shape: f32[1,128], index: 7, kind: input, shape index: {}]   ;;  %s1289_s8 = inlined_call_operand.hbm [shape: f32[8,128], index: 8, kind: output, shape index: {}]  }
   0x1   :  { %14 = vsyncpa [#allocation6], 0 }
   0x2   :  { %15 = vsyncpa [#allocation9], 0 }
   0x3   :  { %16 = vsyncpa [#allocation4], 0  ;;  %s1024_s27 = smov [#allocation5]   ;;  %s884_s9 = scalar_lea.hbm %s1282_s1, 1024 }
   0x4   :  { %s32_s28 = sshll.u32 %s1024_s27, 4  ;;  %p885_p0 = scmp.ne.s32.totalorder %s1282_s1, %s884_s9  ;;  %s33_s28 = int_to_ptr.vmem [resolvable:$true] %s32_s28 }
   0x5   :  { %p888_p1 = scmp.lt.u32.totalorder %s884_s9, %s1282_s1 }
   0x7   :  { %p890_p2 = pnand %p888_p1, %p885_p0 }
   0x9   :  { %893 = shalt.err (!%p890_p2)
}
   0xa   :  { %s894_s14 = scalar_lea.vmem %s33_s28, 1024  ;;  %p899_p4 = scmp.lt.s32.totalorder %s33_s28, %s33_s28 }
   0xb   :  { %p895_p3 = scmp.ne.s32.totalorder %s33_s28, %s894_s14  ;;  %p900_p5 = scmp.lt.s32.totalorder %s894_s14, %s894_s14 }
   0xd   :  { %p901_p6 = por %p900_p5, %p899_p4 }
   0xf   :  { %p902_p7 = pnand %p901_p6, %p895_p3 }
  0x11   :  { %905 = shalt.err (!%p902_p7)
}
  0x12   :  { %s1025_s15 = smov 64   ;;  %s1026_s16 = smov 4  }
  0x13   :  { %38 = dma.hbm_to_vmem [thread:$0]  %s1282_s1, 1024, %s33_s28, [#allocation6], %s1025_s15, %s1025_s15, %s1026_s16  }
  0x14   :  { %s1027_s19 = smov [#allocation8]   ;;  %s1028_s21 = smov [#allocation2]  }
  0x15   :  { %s58_s20 = sshll.u32 %s1027_s19, 4  ;;  %s23_s22 = sshll.u32 %s1028_s21, 4  ;;  %s59_s20 = int_to_ptr.vmem [resolvable:$true] %s58_s20  ;;  %s24_s22 = int_to_ptr.vmem [resolvable:$true] %s23_s22 }
  0x16   :  { %s906_s25 = scalar_lea.hbm %s1285_s4, 1024 }
  0x17   :  { %p907_p8 = scmp.ne.s32.totalorder %s1285_s4, %s906_s25  ;;  %p910_p9 = scmp.lt.u32.totalorder %s906_s25, %s1285_s4 }
  0x19   :  { %p912_p10 = pnand %p910_p9, %p907_p8 }
  0x1b   :  { %915 = shalt.err (!%p912_p10)
}
  0x1c   :  { %s916_s1 = scalar_lea.vmem %s59_s20, 1024  ;;  %p921_p12 = scmp.lt.s32.totalorder %s59_s20, %s59_s20 }
  0x1d   :  { %p917_p11 = scmp.ne.s32.totalorder %s59_s20, %s916_s1  ;;  %p922_p13 = scmp.lt.s32.totalorder %s916_s1, %s916_s1 }
  0x1f   :  { %p923_p0 = por %p922_p13, %p921_p12 }
  0x21   :  { %p924_p1 = pnand %p923_p0, %p917_p11 }
  0x23   :  { %927 = shalt.err (!%p924_p1)
}
  0x24   :  { %64 = dma.hbm_to_vmem [thread:$0]  %s1285_s4, 1024, %s59_s20, [#allocation9], %s1025_s15, %s1025_s15, %s1026_s16  }
  0x25   :  { %s928_s12 = scalar_lea.hbm %s1281_s0, 128 }
  0x26   :  { %p929_p2 = scmp.ne.s32.totalorder %s1281_s0, %s928_s12  ;;  %p932_p3 = scmp.lt.u32.totalorder %s928_s12, %s1281_s0 }
  0x28   :  { %p934_p4 = pnand %p932_p3, %p929_p2 }
  0x2a   :  { %937 = shalt.err (!%p934_p4)
}
  0x2b   :  { %s938_s19 = scalar_lea.vmem %s24_s22, 128  ;;  %p943_p6 = scmp.lt.s32.totalorder %s24_s22, %s24_s22 }
  0x2c   :  { %p939_p5 = scmp.ne.s32.totalorder %s24_s22, %s938_s19  ;;  %p944_p7 = scmp.lt.s32.totalorder %s938_s19, %s938_s19 }
  0x2e   :  { %p945_p8 = por %p944_p7, %p943_p6 }
  0x30   :  { %p946_p9 = pnand %p945_p8, %p939_p5 }
  0x32   :  { %949 = shalt.err (!%p946_p9)
}
  0x33   :  { %26 = dma.hbm_to_vmem [thread:$0]  %s1281_s0, 128, %s24_s22, [#allocation3]  }
  0x34   :  { %s1029_s21 = smov [#allocation7]   ;;  %s1030_s24 = smov [#allocation10]  }
  0x35   :  { %s44_s23 = sshll.u32 %s1029_s21, 4  ;;  %s72_s25 = sshll.u32 %s1030_s24, 4  ;;  %s45_s23 = int_to_ptr.vmem [resolvable:$true] %s44_s23  ;;  %s73_s25 = int_to_ptr.vmem [resolvable:$true] %s72_s25 }
  0x36   :  { %s950_s29 = scalar_lea.hbm %s1283_s2, 1024 }
  0x37   :  { %p951_p10 = scmp.ne.s32.totalorder %s1283_s2, %s950_s29  ;;  %p954_p11 = scmp.lt.u32.totalorder %s950_s29, %s1283_s2 }
  0x39   :  { %p956_p12 = pnand %p954_p11, %p951_p10 }
  0x3b   :  { %959 = shalt.err (!%p956_p12)
}
  0x3c   :  { %s960_s0 = scalar_lea.vmem %s45_s23, 1024  ;;  %p965_p0 = scmp.lt.s32.totalorder %s45_s23, %s45_s23 }
  0x3d   :  { %p961_p13 = scmp.ne.s32.totalorder %s45_s23, %s960_s0  ;;  %p966_p1 = scmp.lt.s32.totalorder %s960_s0, %s960_s0 }
  0x3f   :  { %p967_p2 = por %p966_p1, %p965_p0 }
  0x41   :  { %p968_p3 = pnand %p967_p2, %p961_p13 }
  0x43   :  { %971 = shalt.err (!%p968_p3)
}
  0x44   :  { %50 = dma.hbm_to_vmem [thread:$0]  %s1283_s2, 1024, %s45_s23, [#allocation6], %s1025_s15, %s1025_s15, %s1026_s16  }
  0x45   :  { %s972_s13 = scalar_lea.hbm %s1287_s6, 1024 }
  0x46   :  { %p973_p4 = scmp.ne.s32.totalorder %s1287_s6, %s972_s13  ;;  %p976_p5 = scmp.lt.u32.totalorder %s972_s13, %s1287_s6 }
  0x48   :  { %p978_p6 = pnand %p976_p5, %p973_p4 }
  0x4a   :  { %981 = shalt.err (!%p978_p6)
}
  0x4b   :  { %s982_s4 = scalar_lea.vmem %s73_s25, 1024  ;;  %p987_p8 = scmp.lt.s32.totalorder %s73_s25, %s73_s25 }
  0x4c   :  { %p983_p7 = scmp.ne.s32.totalorder %s73_s25, %s982_s4  ;;  %p988_p9 = scmp.lt.s32.totalorder %s982_s4, %s982_s4 }
  0x4e   :  { %p989_p10 = por %p988_p9, %p987_p8 }
  0x50   :  { %p990_p11 = pnand %p989_p10, %p983_p7 }
  0x52   :  { %993 = shalt.err (!%p990_p11)
}
  0x53   :  { %78 = dma.hbm_to_vmem [thread:$0]  %s1287_s6, 1024, %s73_s25, [#allocation9], %s1025_s15, %s1025_s15, %s1026_s16  }
  0x54   :  { %1016 = dma.done.wait [#allocation3], 128  }
  0x55   :  { %1017 = vsyncadd [#allocation3], 4294967168 }
  0x56   :  { %1018 = dma.done.wait [#allocation6], 2048  }
  0x57   :  { %1019 = vsyncadd [#allocation6], 4294965248 }
  0x58   :  { %1020 = dma.done.wait [#allocation9], 2048  }
  0x59   :  { %1021 = vsyncadd [#allocation9], 4294965248  ;;  %v1031_v0 = vmov 2   ;;  %v1032_v1 = vmov 0   ;;  %v1168_v2 = vld [vmem:[#allocation2] sm:$0xff]  ;;  %v1033_v3 = vmov 3   ;;  %v98_v33 = vlaneseq }
  0x5a   :  { %837 = vset.pattern.permute.xlu1 %v1031_v0  ;;  %835 = vset.pattern.permute.xlu0 %v1032_v1  ;;  %v1034_v4 = vmov 1   ;;  %v1035_v5 = vmov 4   ;;  %v1036_v6 = vmov 5   ;;  %v1037_v7 = vmov 6   ;;  %v852_v11 = vld [vmem:[#allocation5] sm:$0xff]   ;;  %v853_v15 = vld [vmem:[#allocation5 + $0x8] sm:$0xff]  }
  0x5b   :  { %112 = vperm.xlu1 %837, %v1168_v2   ;;  %101 = vperm.xlu0 %835, %v1168_v2   ;;  %v1038_v8 = vmov 8   ;;  %v1039_v9 = vmov 7   ;;  %v1040_v10 = vmov 11   ;;  %v1041_v12 = vmov 0.0   ;;  %v854_v16 = vld [vmem:[#allocation5 + $0x10] sm:$0xff]   ;;  %v855_v19 = vld [vmem:[#allocation5 + $0x18] sm:$0xff]  }
  0x5c   :  { %729 = vmatprep.subr.bf16.mxu0 %v1041_v12  ;;  %749 = vmatprep.subr.bf16.mxu1 %v1041_v12  ;;  %v1042_v13 = vmov 9   ;;  %v1043_v14 = vmov 14   ;;  %v1044_v17 = vmov 10   ;;  %v1045_v18 = vmov 15   ;;  %v856_v21 = vld [vmem:[#allocation5 + $0x20] sm:$0xff]   ;;  %v857_v23 = vld [vmem:[#allocation5 + $0x28] sm:$0xff]  }
  0x5d   :  { %730 = vmatpush3.bf16.msra.mxu0 %v852_v11  ;;  %v1046_v20 = vmov 12   ;;  %v1047_v22 = vmov 13   ;;  %v858_v24 = vld [vmem:[#allocation5 + $0x30] sm:$0xff]   ;;  %v859_v25 = vld [vmem:[#allocation5 + $0x38] sm:$0xff]   ;;  %vm1048_vm0 = vmmov 0   ;;  %v860_v26 = vld [vmem:[#allocation7] sm:$0xff]  }
  0x5e   :  { %731 = vmatprep.subr.bf16.mxu0 %v1041_v12  ;;  %745 = vmatprep.mubr.msk.bf16.mxu0 %vm1048_vm0, %v1041_v12  ;;  %v861_v27 = vld [vmem:[#allocation7 + $0x8] sm:$0xff]   ;;  %v862_v28 = vld [vmem:[#allocation7 + $0x10] sm:$0xff]   ;;  %v863_v29 = vld [vmem:[#allocation7 + $0x18] sm:$0xff]   ;;  %v1207_v34 = vand.u32 127, %v98_v33  ;;  %s1049_s24 = smov [#allocation11]  }
  0x5f   :  { %838 = vset.pattern.permute.xlu1 %v1033_v3  ;;  %836 = vset.pattern.permute.xlu0 %v1034_v4  ;;  %v864_v30 = vld [vmem:[#allocation7 + $0x20] sm:$0xff]   ;;  %v865_v31 = vld [vmem:[#allocation7 + $0x28] sm:$0xff]   ;;  %v866_v32 = vld [vmem:[#allocation7 + $0x30] sm:$0xff]   ;;  %s647_s25 = sshll.u32 %s1049_s24, 4  ;;  %s648_s25 = int_to_ptr.vmem [resolvable:$true] %s647_s25 }
  0x60   :  { %118 = vperm.xlu1 %838, %v1168_v2   ;;  %106 = vperm.xlu0 %836, %v1168_v2   ;;  %p999_p13 = scmp.lt.s32.totalorder %s648_s25, %s648_s25 }
  0x61   :  { %732 = vmatpush3.bf16.msra.mxu0 %v853_v15  ;;  %765 = vmatprep.mubr.msk.bf16.mxu1 %vm1048_vm0, %v1041_v12 }
  0x62   :  { %733 = vmatprep.subr.bf16.mxu0 %v1041_v12  ;;  %750 = vmatpush3.bf16.msra.mxu1 %v860_v26  ;;  %v872_v26 = vld [vmem:[#allocation8 + $0x20] sm:$0xff]  }
  0x63   :  { %751 = vmatprep.subr.bf16.mxu1 %v1041_v12 }
  0x64   :  { %839 = vset.pattern.permute.xlu1 %v1035_v5  ;;  %840 = vset.pattern.permute.xlu0 %v1036_v6 }
  0x65   :  { %124 = vperm.xlu1 %839, %v1168_v2   ;;  %130 = vperm.xlu0 %840, %v1168_v2  }
  0x66   :  { %734 = vmatpush3.bf16.msra.mxu0 %v854_v16  ;;  %752 = vmatpush3.bf16.msra.mxu1 %v861_v27  ;;  %v873_v27 = vld [vmem:[#allocation8 + $0x28] sm:$0xff]  }
  0x67   :  { %735 = vmatprep.subr.bf16.mxu0 %v1041_v12  ;;  %753 = vmatprep.subr.bf16.mxu1 %v1041_v12 }
  0x69   :  { %841 = vset.pattern.permute.xlu1 %v1037_v7  ;;  %843 = vset.pattern.permute.xlu0 %v1038_v8 }
  0x6a   :  { %136 = vperm.xlu1 %841, %v1168_v2   ;;  %148 = vperm.xlu0 %843, %v1168_v2  }
  0x6b   :  { %736 = vmatpush3.bf16.msra.mxu0 %v855_v19  ;;  %754 = vmatpush3.bf16.msra.mxu1 %v862_v28 }
  0x6c   :  { %737 = vmatprep.subr.bf16.mxu0 %v1041_v12  ;;  %755 = vmatprep.subr.bf16.mxu1 %v1041_v12 }
  0x6e   :  { %842 = vset.pattern.permute.xlu1 %v1039_v9  ;;  %846 = vset.pattern.permute.xlu0 %v1040_v10 }
  0x6f   :  { %142 = vperm.xlu1 %842, %v1168_v2   ;;  %166 = vperm.xlu0 %846, %v1168_v2  }
  0x70   :  { %738 = vmatpush3.bf16.msra.mxu0 %v856_v21  ;;  %756 = vmatpush3.bf16.msra.mxu1 %v863_v29 }
  0x71   :  { %739 = vmatprep.subr.bf16.mxu0 %v1041_v12  ;;  %757 = vmatprep.subr.bf16.mxu1 %v1041_v12 }
  0x73   :  { %844 = vset.pattern.permute.xlu1 %v1042_v13  ;;  %849 = vset.pattern.permute.xlu0 %v1043_v14 }
  0x74   :  { %154 = vperm.xlu1 %844, %v1168_v2   ;;  %184 = vperm.xlu0 %849, %v1168_v2  }
  0x75   :  { %740 = vmatpush3.bf16.msra.mxu0 %v857_v23  ;;  %758 = vmatpush3.bf16.msra.mxu1 %v864_v30  ;;  %v868_v23 = vld [vmem:[#allocation8] sm:$0xff]  }
  0x76   :  { %741 = vmatprep.subr.bf16.mxu0 %v1041_v12  ;;  %759 = vmatprep.subr.bf16.mxu1 %v1041_v12 }
  0x78   :  { %845 = vset.pattern.permute.xlu1 %v1044_v17  ;;  %851 = vset.pattern.permute.xlu0 %v1045_v18 }
  0x79   :  { %160 = vperm.xlu1 %845, %v1168_v2   ;;  %742 = vmatpush3.bf16.msra.mxu0 %v858_v24  ;;  %v869_v24 = vld [vmem:[#allocation8 + $0x8] sm:$0xff]  }
  0x7a   :  { %743 = vmatprep.subr.bf16.mxu0 %v1041_v12  ;;  %760 = vmatpush3.bf16.msra.mxu1 %v865_v31 }
  0x7b   :  { %761 = vmatprep.subr.bf16.mxu1 %v1041_v12 }
  0x7d   :  { %847 = vset.pattern.permute.xlu1 %v1046_v20  ;;  %744 = vmatpush3.bf16.msra.mxu0 %v859_v25  ;;  %v870_v25 = vld [vmem:[#allocation8 + $0x10] sm:$0xff]  }
  0x7e   :  { %172 = vperm.xlu1 %847, %v1168_v2   ;;  %769 = vmatprep.subr.bf16.mxu0 %v1041_v12 }
  0x7f   :  { %762 = vmatpush3.bf16.msra.mxu1 %v866_v32 }
  0x80   :  { %763 = vmatprep.subr.bf16.mxu1 %v1041_v12 }
  0x82   :  { %848 = vset.pattern.permute.xlu1 %v1047_v22  ;;  %v867_v22 = vld [vmem:[#allocation7 + $0x38] sm:$0xff]  }
  0x83   :  { %178 = vperm.xlu1 %848, %v1168_v2   ;;  %764 = vmatpush3.bf16.msra.mxu1 %v867_v22 }
  0x84   :  { %789 = vmatprep.subr.bf16.mxu1 %v1041_v12 }
  0x87   :  { %850 = vset.pattern.permute.xlu1 %v1045_v18 }
  0x88   :  { %190 = vperm.xlu1 %850, %v1168_v2  }
  0xda   :  { %v113_v35 = vpop.permute.xlu1 %112  ;;  %v102_v36 = vpop.permute.xlu0 %101 }
  0xdb   :  { %vm103_vm1 = vcmp.eq.s32.totalorder %v102_v36, %v1207_v34  ;;  %vm114_vm2 = vcmp.eq.s32.totalorder %v113_v35, %v1207_v34  ;;  %v875_v35 = vld [vmem:[#allocation8 + $0x38] sm:$0xff]   ;;  %v876_v36 = vld [vmem:[#allocation10] sm:$0xff]  }
  0xdc   :  { %v104_v37 = vsel %vm103_vm1, 1, %v1032_v1  ;;  %v115_v42 = vsel %vm114_vm2, 1, %v1032_v1 }
  0xdf   :  { %v119_v38 = vpop.permute.xlu1 %118  ;;  %v107_v39 = vpop.permute.xlu0 %106 }
  0xe0   :  { %vm108_vm3 = vcmp.eq.s32.totalorder %v107_v39, %v1207_v34  ;;  %vm120_vm4 = vcmp.eq.s32.totalorder %v119_v38, %v1207_v34  ;;  %v878_v38 = vld [vmem:[#allocation10 + $0x10] sm:$0xff]   ;;  %v879_v39 = vld [vmem:[#allocation10 + $0x18] sm:$0xff]  }
  0xe1   :  { %v109_v40 = vsel %vm108_vm3, 1, %v1032_v1  ;;  %v121_v46 = vsel %vm120_vm4, 1, %v1032_v1 }
  0xe2   :  { %v110_v41 = vadd.s32 %v109_v40, %v104_v37  ;;  %v877_v37 = vld [vmem:[#allocation10 + $0x8] sm:$0xff]   ;;  %v880_v40 = vld [vmem:[#allocation10 + $0x20] sm:$0xff]  }
  0xe4   :  { %v116_v43 = vadd.s32 %v115_v42, %v110_v41  ;;  %v125_v44 = vpop.permute.xlu1 %124  ;;  %v131_v45 = vpop.permute.xlu0 %130  ;;  %v881_v41 = vld [vmem:[#allocation10 + $0x28] sm:$0xff]   ;;  %v666_v42 = vld [vmem:[%s1284_s3] ss:$0 sm:$0xff] }
  0xe5   :  { %vm126_vm5 = vcmp.eq.s32.totalorder %v125_v44, %v1207_v34  ;;  %vm132_vm6 = vcmp.eq.s32.totalorder %v131_v45, %v1207_v34 }
  0xe6   :  { %v122_v47 = vadd.s32 %v121_v46, %v116_v43  ;;  %v127_v48 = vsel %vm126_vm5, 1, %v1032_v1  ;;  %v133_v50 = vsel %vm132_vm6, 1, %v1032_v1 }
  0xe8   :  { %v128_v49 = vadd.s32 %v127_v48, %v122_v47 }
  0xe9   :  { %v137_v51 = vpop.permute.xlu1 %136  ;;  %v149_v54 = vpop.permute.xlu0 %148 }
  0xea   :  { %vm138_vm7 = vcmp.eq.s32.totalorder %v137_v51, %v1207_v34  ;;  %v134_v52 = vadd.s32 %v133_v50, %v128_v49  ;;  %vm150_vm9 = vcmp.eq.s32.totalorder %v149_v54, %v1207_v34  ;;  %v882_v50 = vld [vmem:[#allocation10 + $0x30] sm:$0xff]   ;;  %v883_v51 = vld [vmem:[#allocation10 + $0x38] sm:$0xff]  }
  0xeb   :  { %v139_v53 = vsel %vm138_vm7, 1, %v1032_v1  ;;  %v151_v59 = vsel %vm150_vm9, 1, %v1032_v1 }
  0xec   :  { %v140_v56 = vadd.s32 %v139_v53, %v134_v52  ;;  %v675_v52 = vld [vmem:[%s1286_s5] ss:$0 sm:$0xff]  ;;  %s994_s5 = scalar_lea.vmem %s648_s25, 128 }
  0xed   :  { %p995_p12 = scmp.ne.s32.totalorder %s648_s25, %s994_s5  ;;  %p1000_p0 = scmp.lt.s32.totalorder %s994_s5, %s994_s5 }
  0xee   :  { %v143_v55 = vpop.permute.xlu1 %142  ;;  %v167_v63 = vpop.permute.xlu0 %166 }
  0xef   :  { %vm144_vm8 = vcmp.eq.s32.totalorder %v143_v55, %v1207_v34  ;;  %vm168_vm12 = vcmp.eq.s32.totalorder %v167_v63, %v1207_v34  ;;  %p1001_p1 = por %p1000_p0, %p999_p13 }
  0xf0   :  { %v145_v57 = vsel %vm144_vm8, 1, %v1032_v1  ;;  %v169_v5 = vsel %vm168_vm12, 1, %v1032_v1 }
  0xf1   :  { %v146_v58 = vadd.s32 %v145_v57, %v140_v56  ;;  %p1002_p2 = pnand %p1001_p1, %p995_p12 }
  0xf3   :  { %v155_v60 = vpop.permute.xlu1 %154  ;;  %v152_v61 = vadd.s32 %v151_v59, %v146_v58  ;;  %v185_v7 = vpop.permute.xlu0 %184 }
  0xf4   :  { %vm156_vm10 = vcmp.eq.s32.totalorder %v155_v60, %v1207_v34  ;;  %vm186_vm14 = vcmp.eq.s32.totalorder %v185_v7, %v1207_v34  ;;  %v684_v60 = vld [vmem:[%s1288_s7] ss:$0 sm:$0xff] }
  0xf5   :  { %v157_v62 = vsel %vm156_vm10, 1, %v1032_v1  ;;  %v187_v14 = vsel %vm186_vm14, 1, %v1032_v1 }
  0xf6   :  { %v158_v2 = vadd.s32 %v157_v62, %v152_v61 }
  0xf8   :  { %v161_v0 = vpop.permute.xlu1 %160 }
  0xf9   :  { %vm162_vm11 = vcmp.eq.s32.totalorder %v161_v0, %v1207_v34 }
  0xfa   :  { %v163_v3 = vsel %vm162_vm11, 1, %v1032_v1 }
  0xfb   :  { %v164_v4 = vadd.s32 %v163_v3, %v158_v2 }
  0xfd   :  { %v173_v6 = vpop.permute.xlu1 %172  ;;  %v170_v8 = vadd.s32 %v169_v5, %v164_v4 }
  0xfe   :  { %vm174_vm13 = vcmp.eq.s32.totalorder %v173_v6, %v1207_v34 }
  0xff   :  { %v175_v9 = vsel %vm174_vm13, 1, %v1032_v1 }
 0x100   :  { %v176_v11 = vadd.s32 %v175_v9, %v170_v8 }
 0x102   :  { %v179_v10 = vpop.permute.xlu1 %178 }
 0x103   :  { %vm180_vm15 = vcmp.eq.s32.totalorder %v179_v10, %v1207_v34 }
 0x104   :  { %v181_v13 = vsel %vm180_vm15, 1, %v1032_v1 }
 0x105   :  { %v182_v15 = vadd.s32 %v181_v13, %v176_v11 }
 0x107   :  { %v188_v16 = vadd.s32 %v187_v14, %v182_v15  ;;  %v191_v17 = vpop.permute.xlu1 %190 }
 0x108   :  { %vm192_vm1 = vcmp.eq.s32.totalorder %v191_v17, %v1207_v34  ;;  %v874_v34 = vld [vmem:[#allocation8 + $0x30] sm:$0xff]  }
 0x109   :  { %v193_v18 = vsel %vm192_vm1, 1, %v1032_v1  ;;  %v871_v1 = vld [vmem:[#allocation8 + $0x18] sm:$0xff]  }
 0x10a   :  { %v194_v19 = vadd.s32 %v193_v18, %v188_v16 }
 0x10c   :  { %v195_v20 = vcvt.s32.f32 %v194_v19 }
 0x10e   :  { %v196_v21 = vpack.c.bf16 %v195_v20, %v195_v20 }
 0x110   :  { %746 = vmatmul.mubr.bf16.vlgmr.msra.gmra.mrb[0].mxu0 %v196_v21 }
 0x111   :  { %785 = vmatprep.mubr.msk.bf16.mxu0 %vm1048_vm0, %v1041_v12  ;;  %770 = vmatpush3.bf16.msra.mxu0 %v868_v23 }
 0x112   :  { %771 = vmatprep.subr.bf16.mxu0 %v1041_v12 }
 0x115   :  { %772 = vmatpush3.bf16.msra.mxu0 %v869_v24 }
 0x116   :  { %773 = vmatprep.subr.bf16.mxu0 %v1041_v12 }
 0x119   :  { %774 = vmatpush3.bf16.msra.mxu0 %v870_v25 }
 0x11a   :  { %775 = vmatprep.subr.bf16.mxu0 %v1041_v12 }
 0x11d   :  { %776 = vmatpush3.bf16.msra.mxu0 %v871_v1 }
 0x11e   :  { %777 = vmatprep.subr.bf16.mxu0 %v1041_v12 }
 0x121   :  { %778 = vmatpush3.bf16.msra.mxu0 %v872_v26 }
 0x122   :  { %779 = vmatprep.subr.bf16.mxu0 %v1041_v12 }
 0x125   :  { %780 = vmatpush3.bf16.msra.mxu0 %v873_v27 }
 0x126   :  { %781 = vmatprep.subr.bf16.mxu0 %v1041_v12 }
 0x129   :  { %782 = vmatpush3.bf16.msra.mxu0 %v874_v34 }
 0x12a   :  { %783 = vmatprep.subr.bf16.mxu0 %v1041_v12 }
 0x12d   :  { %784 = vmatpush3.bf16.msra.mxu0 %v875_v35 }
 0x1e3   :  { %v295_v28 = vpop.f32.mrb[0].mxu0 }
 0x1e4   :  { %v301_v29 = vmul.f32 0.0625, %v295_v28  ;;  %v747_v30 = vpop.f32.mrb[1].mxu0 }
 0x1e5   :  { %v298_v31 = vpop.f32.mrb[2].mxu0 }
 0x1e6   :  { %v302_v32 = vpack.c.bf16 %v301_v29, %v301_v29  ;;  %v748_v33 = vpop.f32.mrb[3].mxu0 }
 0x1e8   :  { %766 = vmatmul.mubr.bf16.vlgmr.msra.gmra.mrb[0].mxu1 %v302_v32 }
 0x1e9   :  { %805 = vmatprep.mubr.msk.bf16.mxu1 %vm1048_vm0, %v1041_v12  ;;  %790 = vmatpush3.bf16.msra.mxu1 %v876_v36 }
 0x1ea   :  { %791 = vmatprep.subr.bf16.mxu1 %v1041_v12 }
 0x1ed   :  { %792 = vmatpush3.bf16.msra.mxu1 %v877_v37 }
 0x1ee   :  { %793 = vmatprep.subr.bf16.mxu1 %v1041_v12 }
 0x1f1   :  { %794 = vmatpush3.bf16.msra.mxu1 %v878_v38 }
 0x1f2   :  { %795 = vmatprep.subr.bf16.mxu1 %v1041_v12 }
 0x1f5   :  { %796 = vmatpush3.bf16.msra.mxu1 %v879_v39 }
 0x1f6   :  { %797 = vmatprep.subr.bf16.mxu1 %v1041_v12 }
 0x1f9   :  { %798 = vmatpush3.bf16.msra.mxu1 %v880_v40 }
 0x1fa   :  { %799 = vmatprep.subr.bf16.mxu1 %v1041_v12 }
 0x1fd   :  { %800 = vmatpush3.bf16.msra.mxu1 %v881_v41 }
 0x1fe   :  { %801 = vmatprep.subr.bf16.mxu1 %v1041_v12 }
 0x201   :  { %802 = vmatpush3.bf16.msra.mxu1 %v882_v50 }
 0x202   :  { %803 = vmatprep.subr.bf16.mxu1 %v1041_v12 }
 0x205   :  { %804 = vmatpush3.bf16.msra.mxu1 %v883_v51 }
 0x2bb   :  { %v408_v43 = vpop.f32.mrb[0].mxu1 }
 0x2bc   :  { %v409_v44 = vadd.f32 %v666_v42, %v408_v43  ;;  %v767_v45 = vpop.f32.mrb[1].mxu1 }
 0x2bd   :  { %v411_v46 = vpop.f32.mrb[2].mxu1 }
 0x2be   :  { %v414_v47 = vmax.f32 %v409_v44, 0.0  ;;  %v768_v48 = vpop.f32.mrb[3].mxu1 }
 0x2c0   :  { %v415_v49 = vpack.c.bf16 %v414_v47, %v414_v47 }
 0x2c2   :  { %786 = vmatmul.mubr.bf16.vlgmr.msra.gmra.mrb[4].mxu0 %v415_v49 }
 0x395   :  { %v521_v53 = vpop.f32.mrb[4].mxu0 }
 0x396   :  { %v522_v54 = vadd.f32 %v675_v52, %v521_v53  ;;  %v787_v55 = vpop.f32.mrb[5].mxu0 }
 0x397   :  { %v524_v56 = vpop.f32.mrb[6].mxu0 }
 0x398   :  { %v527_v57 = vmax.f32 %v522_v54, 0.0  ;;  %v788_v58 = vpop.f32.mrb[7].mxu0 }
 0x39a   :  { %v528_v59 = vpack.c.bf16 %v527_v57, %v527_v57 }
 0x39c   :  { %806 = vmatmul.mubr.bf16.vlgmr.msra.gmra.mrb[4].mxu1 %v528_v59 }
 0x46f   :  { %v634_v12 = vpop.f32.mrb[4].mxu1 }
 0x470   :  { %v635_v61 = vadd.f32 %v684_v60, %v634_v12  ;;  %v807_v62 = vpop.f32.mrb[5].mxu1 }
 0x471   :  { %v637_v63 = vpop.f32.mrb[6].mxu1 }
 0x472   :  { %640 = vst [vmem:[#allocation11] sm:$0xff] %v635_v61  ;;  %v808_v0 = vpop.f32.mrb[7].mxu1 }
 0x473   :  { %1005 = shalt.err (!%p1002_p2)
}
 0x474   :  { %s1006_s7 = scalar_lea.hbm %s1289_s8, 128 }
 0x475   :  { %p1007_p3 = scmp.ne.s32.totalorder %s1289_s8, %s1006_s7  ;;  %p1010_p4 = scmp.lt.u32.totalorder %s1006_s7, %s1289_s8 }
 0x477   :  { %p1012_p5 = pnand %p1010_p4, %p1007_p3 }
 0x479   :  { %1015 = shalt.err (!%p1012_p5)
}
 0x47a   :  { %650 = dma.vmem_to_hbm [thread:$0]  %s648_s25, 128, %s1289_s8, [#allocation4]  }
 0x47b   :  { %1022 = dma.done.wait [#allocation4], 128  }
 0x47c   :  { %1023 = vsyncadd [#allocation4], 4294967168 }
 0x47d   :  { %654 = vsyncpa [#allocation3], 1 }
 0x47e   :  { %655 = vsyncpa [#allocation6], 1 }
 0x47f   :  { %656 = vsyncpa [#allocation9], 1 }
 0x480   :  { %657 = vsyncpa [#allocation4], 1 }

</bundles_post_ra>
